<compile_context>
chip_gen: v7x
topology: tpu7x:2x2x1
jax: 0.10.0
libtpu: 0.0.40
codegen_flags: <defaults>
</compile_context>

<pallas_src>
import jax
import jax.numpy as jnp
from jax.experimental import pallas as pl
from jax.experimental.pallas import tpu as pltpu


# ------------------------- fused forward kernel -----------------------------
def _maxpool_lstm_kernel(ids_ref, tab_ref, whh_ref, wr_ref, mask_ref, csum_ref, fcb_ref,
                         o_ref):
    """Fused embedding-gate gather + LSTM + max-over-S + FC + softmax (single invocation).

    ids_ref:  (T*L, 1) int32  token ids, time-major (L rows per timestep)
    tab_ref:  (V, 4H)  bf16   emb @ W_ih^T + (b_ih + b_hh)   (bias folded in)
    whh_ref:  (H, 4H)  bf16   W_hh^T
    wr_ref:   (H, L*C) bf16   FC weight re-laid-out: wr[h, l*C+c] = fc_w[c, l*H+h]
    mask_ref: (L, L*C) f32    diagonal mask: mask[l, j] = (j // C == l)
    csum_ref: (L*C, C) bf16   column-sum selector: csum[j, c] = (j % C == c)
    fcb_ref:  (1, C)   f32    fc bias
    o_ref:    (B, C)   f32    softmax probabilities (output)
    """
    TL = ids_ref.shape[0]
    V = tab_ref.shape[0]
    H = whh_ref.shape[0]
    L = mask_ref.shape[0]
    B = o_ref.shape[0]
    S = TL // (B * L)

    # Input-side gates for ALL timesteps in one MXU op (one-hot gather from the fused
    # emb/W_ih/bias table) -- entirely off the serial recurrence chain.  -> (T*L, 4H) f32
    ids = ids_ref[...]                                               # (TL, 1) int32
    iota_v = jax.lax.broadcasted_iota(jnp.int32, (TL, V), 1)
    onehot = (ids == iota_v).astype(jnp.bfloat16)                    # (TL, V), exact 0/1
    xg = jnp.dot(onehot, tab_ref[...], preferred_element_type=jnp.float32)

    whh = whh_ref[...]                                               # (H, 4H)  bf16
    wr = wr_ref[...]                                                 # (H, L*C) bf16
    mask = mask_ref[...]                                             # (L, L*C) f32
    csum = csum_ref[...]                                             # (L*C, C) bf16
    fcb = fcb_ref[...]                                               # (1, C)   f32

    h = jnp.zeros((L, H), jnp.float32)
    c = jnp.zeros((L, H), jnp.float32)

    # Fully-unrolled recurrence over T = B*S timesteps.  h/c carry across ALL timesteps,
    # including batch-group boundaries, matching nn.LSTM run on the (B*S, L, E) view.
    for b in range(B):
        mb = None
        for s in range(S):
            t = b * S + s
            gates = xg[t * L:(t + 1) * L, :] + jnp.dot(
                h.astype(jnp.bfloat16), whh, preferred_element_type=jnp.float32)   # (L, 4H)

            # Full-width activations on one (8,128) vreg, then lane-slice.
            # PyTorch LSTM gate order: i, f, g, o.
            sig = jax.nn.sigmoid(gates)
            th = jnp.tanh(gates)
            i_g = sig[:, 0:H]
            f_g = sig[:, H:2 * H]
            g_g = th[:, 2 * H:3 * H]
            o_g = sig[:, 3 * H:4 * H]

            c = f_g * c + i_g * g_g
            h = o_g * jnp.tanh(c)
            mb = h if s == 0 else jnp.maximum(mb, h)                 # online max over sentences

        # Fused FC + softmax head for this batch, straight from the vreg-resident (L, H)
        # max-pooled block (no feats scratch, no reshape, no masked row scatter):
        #   logits[c] = sum_l sum_h mb[l,h] * fc_w[c, l*H+h] + fc_b[c]
        # evaluated as   sum_rows((mb @ wr) * mask) @ csum  + fc_b
        yb = jnp.dot(mb.astype(jnp.bfloat16), wr,
                     preferred_element_type=jnp.float32)             # (L, L*C)
        v = jnp.sum(yb * mask, axis=0, keepdims=True)                # (1, L*C)
        logits = jnp.dot(v.astype(jnp.bfloat16), csum,
                         preferred_element_type=jnp.float32) + fcb   # (1, C)
        z = logits - jnp.max(logits, axis=-1, keepdims=True)
        e = jnp.exp(z)
        o_ref[b:b + 1, :] = e / jnp.sum(e, axis=-1, keepdims=True)


# --------------------- one-time parameter packing (init) ---------------------
def pack_params(params, max_sent_length):
    """Hoisted out of the per-call forward: all transposes / casts / folds done once."""
    H = params["w_hh"].shape[1]
    C = params["fc_w"].shape[0]
    L = max_sent_length

    bias = (params["b_ih"] + params["b_hh"]).astype(jnp.float32)
    # Embedding + input projection + bias folded into one lookup table (V, 4H).
    tab = (params["emb"].astype(jnp.float32) @ params["w_ih"].T.astype(jnp.float32)
           + bias[None, :]).astype(jnp.bfloat16)
    whh_t = params["w_hh"].T.astype(jnp.bfloat16)                                  # (H, 4H)

    # FC weight re-laid-out so the head never needs an in-kernel reshape:
    #   wr[h, l*C + c] = fc_w[c, l*H + h]
    wr = jnp.transpose(params["fc_w"].reshape(C, L, H), (2, 1, 0)).reshape(H, L * C)
    wr = wr.astype(jnp.bfloat16)
    mask = (jnp.arange(L)[:, None] == (jnp.arange(L * C)[None, :] // C)).astype(jnp.float32)
    csum = ((jnp.arange(L * C)[:, None] % C) == jnp.arange(C)[None, :]).astype(jnp.bfloat16)
    fcb = params["fc_b"].reshape(1, C).astype(jnp.float32)

    return {"tab": tab, "whh_t": whh_t, "wr": wr, "mask": mask, "csum": csum, "fcb": fcb}


# ------------------------------ wrapper --------------------------------------
def maxpool_test_forward(packed, x, pad_mask=None, e1_mask=None, e2_mask=None):
    """Forward pass. pad_mask / e1_mask / e2_mask are unused (matches the module)."""
    B, S, L = x.shape
    C = packed["fcb"].shape[1]
    ids = x.reshape(B * S * L, 1).astype(jnp.int32)     # only per-call prep: a tiny reshape

    vmem = pl.BlockSpec(memory_space=pltpu.MemorySpace.VMEM)
    return pl.pallas_call(
        _maxpool_lstm_kernel,
        out_shape=jax.ShapeDtypeStruct((B, C), jnp.float32),
        in_specs=[vmem] * 7,
        out_specs=vmem,
    )(ids, packed["tab"], packed["whh_t"], packed["wr"],
      packed["mask"], packed["csum"], packed["fcb"])


# ------------------------------ JAX reference --------------------------------
def _reference_forward(params, x):
    B, S, L = x.shape
    H = params["w_hh"].shape[1]
    x_emb = jnp.take(params["emb"], x, axis=0)
    E = x_emb.shape[-1]
    x_seq = x_emb.reshape(B * S, L, E).astype(jnp.float32)
    b = params["b_ih"] + params["b_hh"]

    def step(carry, x_t):
        h, c = carry
        gates = x_t @ params["w_ih"].T + h @ params["w_hh"].T + b
        i = jax.nn.sigmoid(gates[:, 0:H])
        f = jax.nn.sigmoid(gates[:, H:2 * H])
        g = jnp.tanh(gates[:, 2 * H:3 * H])
        o = jax.nn.sigmoid(gates[:, 3 * H:4 * H])
        c = f * c + i * g
        h = o * jnp.tanh(c)
        return (h, c), h

    h0 = jnp.zeros((L, H), jnp.float32)
    c0 = jnp.zeros((L, H), jnp.float32)
    _, hs = jax.lax.scan(step, (h0, c0), x_seq)            # (T, L, H)
    feats = hs.reshape(B, S, L * H)
    m = jnp.max(feats, axis=1)
    logits = m @ params["fc_w"].T + params["fc_b"]
    return jax.nn.softmax(logits, axis=-1)


# --------------------------------- main --------------------------------------
if __name__ == "__main__":
    # Module hyper-params (fc in_features = hidden_size * max_sent_length).
    num_embeddings = 50
    embedding_dim = 16
    hidden_size = 32
    num_classes = 5
    max_sent_length = 8

    B, S, L = 2, 3, max_sent_length

    key = jax.random.PRNGKey(0)
    ks = jax.random.split(key, 8)
    params = {
        "emb":  0.1 * jax.random.normal(ks[0], (num_embeddings, embedding_dim), jnp.float32),
        "w_ih": 0.1 * jax.random.normal(ks[1], (4 * hidden_size, embedding_dim), jnp.float32),
        "w_hh": 0.1 * jax.random.normal(ks[2], (4 * hidden_size, hidden_size), jnp.float32),
        "b_ih": 0.1 * jax.random.normal(ks[3], (4 * hidden_size,), jnp.float32),
        "b_hh": 0.1 * jax.random.normal(ks[4], (4 * hidden_size,), jnp.float32),
        "fc_w": 0.1 * jax.random.normal(ks[5], (num_classes, hidden_size * max_sent_length), jnp.float32),
        "fc_b": 0.1 * jax.random.normal(ks[6], (num_classes,), jnp.float32),
    }

    x = jax.random.randint(ks[7], (B, S, L), 0, num_embeddings, dtype=jnp.int32)
    pad_mask = jnp.ones((B, S, L), jnp.float32)   # unused by the module's forward
    e1_mask = jnp.zeros((B, S, L), jnp.float32)   # unused
    e2_mask = jnp.zeros((B, S, L), jnp.float32)   # unused

    packed = pack_params(params, max_sent_length)          # one-time init
    fwd = jax.jit(maxpool_test_forward)

    out = fwd(packed, x, pad_mask, e1_mask, e2_mask)
    out = jax.block_until_ready(out)

    ref = jax.block_until_ready(_reference_forward(params, x))
    assert out.shape == (B, num_classes)
    assert jnp.allclose(out, ref, atol=1e-2), "Pallas output mismatch vs JAX reference"

    print("KERNEL_OK")
</pallas_src>

<mosaic_0001>
module attributes {stable_mosaic.version = 11 : i64} {
  func.func @_maxpool_lstm_kernel(%arg0: memref<48x1xi32, #tpu.memory_space<vmem>>, %arg1: memref<50x128xbf16, #tpu.memory_space<vmem>>, %arg2: memref<32x128xbf16, #tpu.memory_space<vmem>>, %arg3: memref<32x40xbf16, #tpu.memory_space<vmem>>, %arg4: memref<8x40xf32, #tpu.memory_space<vmem>>, %arg5: memref<40x5xbf16, #tpu.memory_space<vmem>>, %arg6: memref<1x5xf32, #tpu.memory_space<vmem>>, %arg7: memref<2x5xf32, #tpu.memory_space<vmem>>) attributes {dimension_semantics = [], scalar_prefetch = 0 : i64, scratch_operands = 0 : i64, tpu.core_type = #tpu.core_type<tc>} {
    %c0 = arith.constant 0 : index
    %c0_0 = arith.constant 0 : index
    %0 = vector.load %arg0[%c0, %c0_0] : memref<48x1xi32, #tpu.memory_space<vmem>>, vector<48x1xi32>
    %1 = tpu.iota {dimensions = array<i32: 1>} : vector<48x50xi32>
    %2 = vector.broadcast %0 : vector<48x1xi32> to vector<48x50xi32>
    %3 = arith.cmpi eq, %2, %1 : vector<48x50xi32>
    %4 = arith.extui %3 : vector<48x50xi1> to vector<48x50xi32>
    %5 = arith.sitofp %4 : vector<48x50xi32> to vector<48x50xf32>
    %6 = arith.truncf %5 : vector<48x50xf32> to vector<48x50xbf16>
    %c0_1 = arith.constant 0 : index
    %c0_2 = arith.constant 0 : index
    %7 = vector.load %arg1[%c0_1, %c0_2] : memref<50x128xbf16, #tpu.memory_space<vmem>>, vector<50x128xbf16>
    %cst = arith.constant dense<0.000000e+00> : vector<48x128xf32>
    %8 = tpu.matmul %6, %7, %cst {dimension_numbers = #tpu.dot_dimension_numbers<[1], [0], [0], [1], [0, 0, 1, 1], [], []>} : vector<48x50xbf16>, vector<50x128xbf16>, vector<48x128xf32> -> vector<48x128xf32>
    %c0_3 = arith.constant 0 : index
    %c0_4 = arith.constant 0 : index
    %9 = vector.load %arg2[%c0_3, %c0_4] : memref<32x128xbf16, #tpu.memory_space<vmem>>, vector<32x128xbf16>
    %c0_5 = arith.constant 0 : index
    %c0_6 = arith.constant 0 : index
    %10 = vector.load %arg3[%c0_5, %c0_6] : memref<32x40xbf16, #tpu.memory_space<vmem>>, vector<32x40xbf16>
    %c0_7 = arith.constant 0 : index
    %c0_8 = arith.constant 0 : index
    %11 = vector.load %arg4[%c0_7, %c0_8] : memref<8x40xf32, #tpu.memory_space<vmem>>, vector<8x40xf32>
    %c0_9 = arith.constant 0 : index
    %c0_10 = arith.constant 0 : index
    %12 = vector.load %arg5[%c0_9, %c0_10] : memref<40x5xbf16, #tpu.memory_space<vmem>>, vector<40x5xbf16>
    %c0_11 = arith.constant 0 : index
    %c0_12 = arith.constant 0 : index
    %13 = vector.load %arg6[%c0_11, %c0_12] : memref<1x5xf32, #tpu.memory_space<vmem>>, vector<1x5xf32>
    %cst_13 = arith.constant 0.000000e+00 : f32
    %14 = vector.broadcast %cst_13 : f32 to vector<8x32xf32>
    %cst_14 = arith.constant 0.000000e+00 : f32
    %15 = vector.broadcast %cst_14 : f32 to vector<8x32xf32>
    %16 = vector.extract_strided_slice %8 {offsets = [0, 0], sizes = [8, 128], strides = [1, 1]} : vector<48x128xf32> to vector<8x128xf32>
    %17 = arith.truncf %14 : vector<8x32xf32> to vector<8x32xbf16>
    %cst_15 = arith.constant dense<0.000000e+00> : vector<8x128xf32>
    %18 = tpu.matmul %17, %9, %cst_15 {dimension_numbers = #tpu.dot_dimension_numbers<[1], [0], [0], [1], [0, 0, 1, 1], [], []>} : vector<8x32xbf16>, vector<32x128xbf16>, vector<8x128xf32> -> vector<8x128xf32>
    %19 = arith.addf %16, %18 : vector<8x128xf32>
    %20 = arith.negf %19 : vector<8x128xf32>
    %21 = math.exp %20 : vector<8x128xf32>
    %cst_16 = arith.constant 1.000000e+00 : f32
    %22 = vector.broadcast %cst_16 : f32 to vector<8x128xf32>
    %23 = arith.addf %22, %21 : vector<8x128xf32>
    %24 = arith.divf %22, %23 : vector<8x128xf32>
    %25 = math.tanh %19 : vector<8x128xf32>
    %26 = vector.extract_strided_slice %24 {offsets = [0, 0], sizes = [8, 32], strides = [1, 1]} : vector<8x128xf32> to vector<8x32xf32>
    %27 = vector.extract_strided_slice %24 {offsets = [0, 32], sizes = [8, 32], strides = [1, 1]} : vector<8x128xf32> to vector<8x32xf32>
    %28 = vector.extract_strided_slice %25 {offsets = [0, 64], sizes = [8, 32], strides = [1, 1]} : vector<8x128xf32> to vector<8x32xf32>
    %29 = vector.extract_strided_slice %24 {offsets = [0, 96], sizes = [8, 32], strides = [1, 1]} : vector<8x128xf32> to vector<8x32xf32>
    %30 = arith.mulf %27, %15 : vector<8x32xf32>
    %31 = arith.mulf %26, %28 : vector<8x32xf32>
    %32 = arith.addf %30, %31 : vector<8x32xf32>
    %33 = math.tanh %32 : vector<8x32xf32>
    %34 = arith.mulf %29, %33 : vector<8x32xf32>
    %35 = vector.extract_strided_slice %8 {offsets = [8, 0], sizes = [8, 128], strides = [1, 1]} : vector<48x128xf32> to vector<8x128xf32>
    %36 = arith.truncf %34 : vector<8x32xf32> to vector<8x32xbf16>
    %cst_17 = arith.constant dense<0.000000e+00> : vector<8x128xf32>
    %37 = tpu.matmul %36, %9, %cst_17 {dimension_numbers = #tpu.dot_dimension_numbers<[1], [0], [0], [1], [0, 0, 1, 1], [], []>} : vector<8x32xbf16>, vector<32x128xbf16>, vector<8x128xf32> -> vector<8x128xf32>
    %38 = arith.addf %35, %37 : vector<8x128xf32>
    %39 = arith.negf %38 : vector<8x128xf32>
    %40 = math.exp %39 : vector<8x128xf32>
    %cst_18 = arith.constant 1.000000e+00 : f32
    %41 = vector.broadcast %cst_18 : f32 to vector<8x128xf32>
    %42 = arith.addf %41, %40 : vector<8x128xf32>
    %43 = arith.divf %41, %42 : vector<8x128xf32>
    %44 = math.tanh %38 : vector<8x128xf32>
    %45 = vector.extract_strided_slice %43 {offsets = [0, 0], sizes = [8, 32], strides = [1, 1]} : vector<8x128xf32> to vector<8x32xf32>
    %46 = vector.extract_strided_slice %43 {offsets = [0, 32], sizes = [8, 32], strides = [1, 1]} : vector<8x128xf32> to vector<8x32xf32>
    %47 = vector.extract_strided_slice %44 {offsets = [0, 64], sizes = [8, 32], strides = [1, 1]} : vector<8x128xf32> to vector<8x32xf32>
    %48 = vector.extract_strided_slice %43 {offsets = [0, 96], sizes = [8, 32], strides = [1, 1]} : vector<8x128xf32> to vector<8x32xf32>
    %49 = arith.mulf %46, %32 : vector<8x32xf32>
    %50 = arith.mulf %45, %47 : vector<8x32xf32>
    %51 = arith.addf %49, %50 : vector<8x32xf32>
    %52 = math.tanh %51 : vector<8x32xf32>
    %53 = arith.mulf %48, %52 : vector<8x32xf32>
    %54 = arith.maximumf %34, %53 : vector<8x32xf32>
    %55 = vector.extract_strided_slice %8 {offsets = [16, 0], sizes = [8, 128], strides = [1, 1]} : vector<48x128xf32> to vector<8x128xf32>
    %56 = arith.truncf %53 : vector<8x32xf32> to vector<8x32xbf16>
    %cst_19 = arith.constant dense<0.000000e+00> : vector<8x128xf32>
    %57 = tpu.matmul %56, %9, %cst_19 {dimension_numbers = #tpu.dot_dimension_numbers<[1], [0], [0], [1], [0, 0, 1, 1], [], []>} : vector<8x32xbf16>, vector<32x128xbf16>, vector<8x128xf32> -> vector<8x128xf32>
    %58 = arith.addf %55, %57 : vector<8x128xf32>
    %59 = arith.negf %58 : vector<8x128xf32>
    %60 = math.exp %59 : vector<8x128xf32>
    %cst_20 = arith.constant 1.000000e+00 : f32
    %61 = vector.broadcast %cst_20 : f32 to vector<8x128xf32>
    %62 = arith.addf %61, %60 : vector<8x128xf32>
    %63 = arith.divf %61, %62 : vector<8x128xf32>
    %64 = math.tanh %58 : vector<8x128xf32>
    %65 = vector.extract_strided_slice %63 {offsets = [0, 0], sizes = [8, 32], strides = [1, 1]} : vector<8x128xf32> to vector<8x32xf32>
    %66 = vector.extract_strided_slice %63 {offsets = [0, 32], sizes = [8, 32], strides = [1, 1]} : vector<8x128xf32> to vector<8x32xf32>
    %67 = vector.extract_strided_slice %64 {offsets = [0, 64], sizes = [8, 32], strides = [1, 1]} : vector<8x128xf32> to vector<8x32xf32>
    %68 = vector.extract_strided_slice %63 {offsets = [0, 96], sizes = [8, 32], strides = [1, 1]} : vector<8x128xf32> to vector<8x32xf32>
    %69 = arith.mulf %66, %51 : vector<8x32xf32>
    %70 = arith.mulf %65, %67 : vector<8x32xf32>
    %71 = arith.addf %69, %70 : vector<8x32xf32>
    %72 = math.tanh %71 : vector<8x32xf32>
    %73 = arith.mulf %68, %72 : vector<8x32xf32>
    %74 = arith.maximumf %54, %73 : vector<8x32xf32>
    %75 = arith.truncf %74 : vector<8x32xf32> to vector<8x32xbf16>
    %cst_21 = arith.constant dense<0.000000e+00> : vector<8x40xf32>
    %76 = tpu.matmul %75, %10, %cst_21 {dimension_numbers = #tpu.dot_dimension_numbers<[1], [0], [0], [1], [0, 0, 1, 1], [], []>} : vector<8x32xbf16>, vector<32x40xbf16>, vector<8x40xf32> -> vector<8x40xf32>
    %77 = arith.mulf %76, %11 : vector<8x40xf32>
    %cst_22 = arith.constant dense<0.000000e+00> : vector<40xf32>
    %78 = vector.multi_reduction <add>, %77, %cst_22 [0] : vector<8x40xf32> to vector<40xf32>
    %79 = vector.shape_cast %78 : vector<40xf32> to vector<1x40xf32>
    %80 = arith.truncf %79 : vector<1x40xf32> to vector<1x40xbf16>
    %cst_23 = arith.constant dense<0.000000e+00> : vector<1x5xf32>
    %81 = tpu.matmul %80, %12, %cst_23 {dimension_numbers = #tpu.dot_dimension_numbers<[1], [0], [0], [1], [0, 0, 1, 1], [], []>} : vector<1x40xbf16>, vector<40x5xbf16>, vector<1x5xf32> -> vector<1x5xf32>
    %82 = arith.addf %81, %13 : vector<1x5xf32>
    %cst_24 = arith.constant dense<0xFF800000> : vector<1xf32>
    %83 = vector.multi_reduction <maximumf>, %82, %cst_24 [1] : vector<1x5xf32> to vector<1xf32>
    %84 = vector.shape_cast %83 : vector<1xf32> to vector<1x1xf32>
    %85 = vector.broadcast %84 : vector<1x1xf32> to vector<1x5xf32>
    %86 = arith.subf %82, %85 : vector<1x5xf32>
    %87 = math.exp %86 : vector<1x5xf32>
    %cst_25 = arith.constant dense<0.000000e+00> : vector<1xf32>
    %88 = vector.multi_reduction <add>, %87, %cst_25 [1] : vector<1x5xf32> to vector<1xf32>
    %89 = vector.shape_cast %88 : vector<1xf32> to vector<1x1xf32>
    %90 = vector.broadcast %89 : vector<1x1xf32> to vector<1x5xf32>
    %91 = arith.divf %87, %90 : vector<1x5xf32>
    %c0_26 = arith.constant 0 : index
    %c0_27 = arith.constant 0 : index
    %92 = vector.load %arg7[%c0_26, %c0_27] : memref<2x5xf32, #tpu.memory_space<vmem>>, vector<1x5xf32>
    tpu.vector_store %arg7[%c0_26, %c0_27], %91 {strides = array<i32>} : memref<2x5xf32, #tpu.memory_space<vmem>>, vector<1x5xf32>,
    %93 = vector.extract_strided_slice %8 {offsets = [24, 0], sizes = [8, 128], strides = [1, 1]} : vector<48x128xf32> to vector<8x128xf32>
    %94 = arith.truncf %73 : vector<8x32xf32> to vector<8x32xbf16>
    %cst_28 = arith.constant dense<0.000000e+00> : vector<8x128xf32>
    %95 = tpu.matmul %94, %9, %cst_28 {dimension_numbers = #tpu.dot_dimension_numbers<[1], [0], [0], [1], [0, 0, 1, 1], [], []>} : vector<8x32xbf16>, vector<32x128xbf16>, vector<8x128xf32> -> vector<8x128xf32>
    %96 = arith.addf %93, %95 : vector<8x128xf32>
    %97 = arith.negf %96 : vector<8x128xf32>
    %98 = math.exp %97 : vector<8x128xf32>
    %cst_29 = arith.constant 1.000000e+00 : f32
    %99 = vector.broadcast %cst_29 : f32 to vector<8x128xf32>
    %100 = arith.addf %99, %98 : vector<8x128xf32>
    %101 = arith.divf %99, %100 : vector<8x128xf32>
    %102 = math.tanh %96 : vector<8x128xf32>
    %103 = vector.extract_strided_slice %101 {offsets = [0, 0], sizes = [8, 32], strides = [1, 1]} : vector<8x128xf32> to vector<8x32xf32>
    %104 = vector.extract_strided_slice %101 {offsets = [0, 32], sizes = [8, 32], strides = [1, 1]} : vector<8x128xf32> to vector<8x32xf32>
    %105 = vector.extract_strided_slice %102 {offsets = [0, 64], sizes = [8, 32], strides = [1, 1]} : vector<8x128xf32> to vector<8x32xf32>
    %106 = vector.extract_strided_slice %101 {offsets = [0, 96], sizes = [8, 32], strides = [1, 1]} : vector<8x128xf32> to vector<8x32xf32>
    %107 = arith.mulf %104, %71 : vector<8x32xf32>
    %108 = arith.mulf %103, %105 : vector<8x32xf32>
    %109 = arith.addf %107, %108 : vector<8x32xf32>
    %110 = math.tanh %109 : vector<8x32xf32>
    %111 = arith.mulf %106, %110 : vector<8x32xf32>
    %112 = vector.extract_strided_slice %8 {offsets = [32, 0], sizes = [8, 128], strides = [1, 1]} : vector<48x128xf32> to vector<8x128xf32>
    %113 = arith.truncf %111 : vector<8x32xf32> to vector<8x32xbf16>
    %cst_30 = arith.constant dense<0.000000e+00> : vector<8x128xf32>
    %114 = tpu.matmul %113, %9, %cst_30 {dimension_numbers = #tpu.dot_dimension_numbers<[1], [0], [0], [1], [0, 0, 1, 1], [], []>} : vector<8x32xbf16>, vector<32x128xbf16>, vector<8x128xf32> -> vector<8x128xf32>
    %115 = arith.addf %112, %114 : vector<8x128xf32>
    %116 = arith.negf %115 : vector<8x128xf32>
    %117 = math.exp %116 : vector<8x128xf32>
    %cst_31 = arith.constant 1.000000e+00 : f32
    %118 = vector.broadcast %cst_31 : f32 to vector<8x128xf32>
    %119 = arith.addf %118, %117 : vector<8x128xf32>
    %120 = arith.divf %118, %119 : vector<8x128xf32>
    %121 = math.tanh %115 : vector<8x128xf32>
    %122 = vector.extract_strided_slice %120 {offsets = [0, 0], sizes = [8, 32], strides = [1, 1]} : vector<8x128xf32> to vector<8x32xf32>
    %123 = vector.extract_strided_slice %120 {offsets = [0, 32], sizes = [8, 32], strides = [1, 1]} : vector<8x128xf32> to vector<8x32xf32>
    %124 = vector.extract_strided_slice %121 {offsets = [0, 64], sizes = [8, 32], strides = [1, 1]} : vector<8x128xf32> to vector<8x32xf32>
    %125 = vector.extract_strided_slice %120 {offsets = [0, 96], sizes = [8, 32], strides = [1, 1]} : vector<8x128xf32> to vector<8x32xf32>
    %126 = arith.mulf %123, %109 : vector<8x32xf32>
    %127 = arith.mulf %122, %124 : vector<8x32xf32>
    %128 = arith.addf %126, %127 : vector<8x32xf32>
    %129 = math.tanh %128 : vector<8x32xf32>
    %130 = arith.mulf %125, %129 : vector<8x32xf32>
    %131 = arith.maximumf %111, %130 : vector<8x32xf32>
    %132 = vector.extract_strided_slice %8 {offsets = [40, 0], sizes = [8, 128], strides = [1, 1]} : vector<48x128xf32> to vector<8x128xf32>
    %133 = arith.truncf %130 : vector<8x32xf32> to vector<8x32xbf16>
    %cst_32 = arith.constant dense<0.000000e+00> : vector<8x128xf32>
    %134 = tpu.matmul %133, %9, %cst_32 {dimension_numbers = #tpu.dot_dimension_numbers<[1], [0], [0], [1], [0, 0, 1, 1], [], []>} : vector<8x32xbf16>, vector<32x128xbf16>, vector<8x128xf32> -> vector<8x128xf32>
    %135 = arith.addf %132, %134 : vector<8x128xf32>
    %136 = arith.negf %135 : vector<8x128xf32>
    %137 = math.exp %136 : vector<8x128xf32>
    %cst_33 = arith.constant 1.000000e+00 : f32
    %138 = vector.broadcast %cst_33 : f32 to vector<8x128xf32>
    %139 = arith.addf %138, %137 : vector<8x128xf32>
    %140 = arith.divf %138, %139 : vector<8x128xf32>
    %141 = math.tanh %135 : vector<8x128xf32>
    %142 = vector.extract_strided_slice %140 {offsets = [0, 0], sizes = [8, 32], strides = [1, 1]} : vector<8x128xf32> to vector<8x32xf32>
    %143 = vector.extract_strided_slice %140 {offsets = [0, 32], sizes = [8, 32], strides = [1, 1]} : vector<8x128xf32> to vector<8x32xf32>
    %144 = vector.extract_strided_slice %141 {offsets = [0, 64], sizes = [8, 32], strides = [1, 1]} : vector<8x128xf32> to vector<8x32xf32>
    %145 = vector.extract_strided_slice %140 {offsets = [0, 96], sizes = [8, 32], strides = [1, 1]} : vector<8x128xf32> to vector<8x32xf32>
    %146 = arith.mulf %143, %128 : vector<8x32xf32>
    %147 = arith.mulf %142, %144 : vector<8x32xf32>
    %148 = arith.addf %146, %147 : vector<8x32xf32>
    %149 = math.tanh %148 : vector<8x32xf32>
    %150 = arith.mulf %145, %149 : vector<8x32xf32>
    %151 = arith.maximumf %131, %150 : vector<8x32xf32>
    %152 = arith.truncf %151 : vector<8x32xf32> to vector<8x32xbf16>
    %cst_34 = arith.constant dense<0.000000e+00> : vector<8x40xf32>
    %153 = tpu.matmul %152, %10, %cst_34 {dimension_numbers = #tpu.dot_dimension_numbers<[1], [0], [0], [1], [0, 0, 1, 1], [], []>} : vector<8x32xbf16>, vector<32x40xbf16>, vector<8x40xf32> -> vector<8x40xf32>
    %154 = arith.mulf %153, %11 : vector<8x40xf32>
    %cst_35 = arith.constant dense<0.000000e+00> : vector<40xf32>
    %155 = vector.multi_reduction <add>, %154, %cst_35 [0] : vector<8x40xf32> to vector<40xf32>
    %156 = vector.shape_cast %155 : vector<40xf32> to vector<1x40xf32>
    %157 = arith.truncf %156 : vector<1x40xf32> to vector<1x40xbf16>
    %cst_36 = arith.constant dense<0.000000e+00> : vector<1x5xf32>
    %158 = tpu.matmul %157, %12, %cst_36 {dimension_numbers = #tpu.dot_dimension_numbers<[1], [0], [0], [1], [0, 0, 1, 1], [], []>} : vector<1x40xbf16>, vector<40x5xbf16>, vector<1x5xf32> -> vector<1x5xf32>
    %159 = arith.addf %158, %13 : vector<1x5xf32>
    %cst_37 = arith.constant dense<0xFF800000> : vector<1xf32>
    %160 = vector.multi_reduction <maximumf>, %159, %cst_37 [1] : vector<1x5xf32> to vector<1xf32>
    %161 = vector.shape_cast %160 : vector<1xf32> to vector<1x1xf32>
    %162 = vector.broadcast %161 : vector<1x1xf32> to vector<1x5xf32>
    %163 = arith.subf %159, %162 : vector<1x5xf32>
    %164 = math.exp %163 : vector<1x5xf32>
    %cst_38 = arith.constant dense<0.000000e+00> : vector<1xf32>
    %165 = vector.multi_reduction <add>, %164, %cst_38 [1] : vector<1x5xf32> to vector<1xf32>
    %166 = vector.shape_cast %165 : vector<1xf32> to vector<1x1xf32>
    %167 = vector.broadcast %166 : vector<1x1xf32> to vector<1x5xf32>
    %168 = arith.divf %164, %167 : vector<1x5xf32>
    %c1 = arith.constant 1 : index
    %c0_39 = arith.constant 0 : index
    %169 = vector.load %arg7[%c1, %c0_39] : memref<2x5xf32, #tpu.memory_space<vmem>>, vector<1x5xf32>
    tpu.vector_store %arg7[%c1, %c0_39], %168 {strides = array<i32>} : memref<2x5xf32, #tpu.memory_space<vmem>>, vector<1x5xf32>,
    return
  }
}

</mosaic_0001>

<bundles_post_ra>
// kernel: maxpool_test_forward.1
= control target key start
LH: loop header
LB: loop body
LE: loop exit
PB: predicated region body
PF: predicated region fallthrough
CT: control target
= control target key end

     0   :  { %v1180_v1 = vmov 0   ;;  %v1181_v3 = vmov 0.0   ;;  %vm1182_vm0 = vmmov 0   ;;  %vm113_vm1 = vcmask 1040384   ;;  %s1463_s0 = inlined_call_operand.vmem [shape: s32[48,1], index: 0, kind: input, shape index: {}]   ;;  %s1464_s1 = inlined_call_operand.vmem [shape: bf16[50,128], index: 1, kind: input, shape index: {}]   ;;  %s1465_s2 = inlined_call_operand.vmem [shape: bf16[32,128], index: 2, kind: input, shape index: {}]   ;;  %s1466_s3 = inlined_call_operand.vmem [shape: bf16[32,40], index: 3, kind: input, shape index: {}]   ;;  %s1467_s4 = inlined_call_operand.vmem [shape: f32[8,40], index: 4, kind: input, shape index: {}]   ;;  %s1468_s5 = inlined_call_operand.vmem [shape: bf16[40,5], index: 5, kind: input, shape index: {}]   ;;  %s1469_s6 = inlined_call_operand.vmem [shape: f32[1,5], index: 6, kind: input, shape index: {}]   ;;  %s1470_s7 = inlined_call_operand.hbm [shape: f32[2,5], index: 7, kind: output, shape index: {}]  }
   0x1   :  { %v28_v0 = vld [vmem:[%s1463_s0] sm:$0xff]  ;;  %1087 = vset.pattern.permute.xlu0 %v1180_v1  ;;  %v29_v2 = vld [vmem:[%s1463_s0 + $0x8] sm:$0xff]  ;;  %977 = vmatprep.subr.bf16.mxu0 %v1181_v3  ;;  %v1092_v8 = vld [vmem:[%s1464_s1 + $0x10] sm:$0xff]  }
   0x2   :  { %v1089_v4 = vld [vmem:[%s1464_s1] sm:$0xff]   ;;  %37 = vperm.xlu0 %1087, %v28_v0   ;;  %v1090_v5 = vld [vmem:[%s1464_s1 + $0x8] sm:$0xff]   ;;  %997 = vmatprep.subr.bf16.mxu1 %v1181_v3  ;;  %v1094_v9 = vld [vmem:[%s1464_s1 + $0x18] ss:$0 sps:$4 sm:$0x11]  }
   0x3   :  { %978 = vmatpush3.bf16.msra.mxu0 %v1089_v4  ;;  %v1243_v6 = vld [vmem:[%s1465_s2] sm:$0xff]   ;;  %1088 = vset.pattern.permute.xlu1 %v1180_v1  ;;  %v1250_v7 = vld [vmem:[%s1465_s2 + $0x8] sm:$0xff]  }
   0x4   :  { %979 = vmatprep.subr.bf16.mxu0 %v1181_v3  ;;  %998 = vmatpush3.bf16.msra.mxu1 %v1243_v6 }
   0x5   :  { %999 = vmatprep.subr.bf16.mxu1 %v1181_v3  ;;  %1001 = vmatprep.mubr.msk.bf16.mxu1 %vm1182_vm0, %v1181_v3 }
   0x6   :  { %40 = vperm.xlu0 %1087, %v29_v2   ;;  %985 = vmatprep.mubr.msk.bf16.mxu0 %vm1182_vm0, %v1181_v3 }
   0x7   :  { %980 = vmatpush3.bf16.msra.mxu0 %v1090_v5 }
   0x8   :  { %981 = vmatprep.subr.bf16.mxu0 %v1181_v3  ;;  %1000 = vmatpush3.bf16.msra.mxu1 %v1250_v7 }
   0x9   :  { %1005 = vmatprep.subr.bf16.mxu1 %v1181_v3 }
   0xa   :  { %12 = vsyncpa [#allocation3], 0  ;;  %v115_v10 = vsel %vm113_vm1, %v1094_v9, 0  ;;  %v34_v11 = vlaneseq  ;;  %vm103_vm4 = vcmask 408576   ;;  %s1183_s1 = smov 64   ;;  %s1184_s2 = smov 32  }
   0xb   :  { %982 = vmatpush3.bf16.msra.mxu0 %v1092_v8  ;;  %1002 = vmatmul.mubr.bf16.vlgmr.msra.gmra.mrb[0].mxu1 %v1180_v1  ;;  %vm201_vm5 = vcmask 261120   ;;  %v30_v54 = vld [vmem:[%s1463_s0 + $0x10] sm:$0xff]  ;;  %v31_v59 = vld [vmem:[%s1463_s0 + $0x18] sm:$0xff]  ;;  %vm503_vm8 = vcmask 1043456   ;;  %vm476_vm9 = vcmask 326656   ;;  %vm547_vm12 = vcmask 32768  }
   0xc   :  { %983 = vmatprep.subr.bf16.mxu0 %v1181_v3  ;;  %1006 = vmatpush3.bf16.msra.mxu1 %v1243_v6  ;;  %v1274_v12 = vand.u32 127, %v34_v11 }
   0xd   :  { %1009 = vmatprep.mubr.msk.bf16.mxu1 %vm1182_vm0, %v1181_v3  ;;  %1007 = vmatprep.subr.bf16.mxu1 %v1181_v3 }
   0xf   :  { %984 = vmatpush3.bf16.msra.mxu0 %v115_v10 }
  0x10   :  { %1029 = vmatprep.subr.bf16.mxu0 %v1181_v3  ;;  %1008 = vmatpush3.bf16.msra.mxu1 %v1250_v7 }
  0x11   :  { %1013 = vmatprep.subr.bf16.mxu1 %v1181_v3 }
  0x81   :  { %v38_v13 = vpop.permute.xlu0 %37 }
  0x82   :  { %vm54_vm2 = vcmp.eq.s32.totalorder %v38_v13, %v1274_v12 }
  0x83   :  { %v903_v15 = vsel %vm54_vm2, 1.0, %v1181_v3 }
  0x85   :  { %v41_v14 = vpop.permute.xlu0 %40 }
  0x86   :  { %vm55_vm3 = vcmp.eq.s32.totalorder %v41_v14, %v1274_v12 }
  0x87   :  { %v904_v16 = vsel %vm55_vm3, 1.0, %v1181_v3 }
  0x88   :  { %v72_v17 = vpack.c.bf16 %v904_v16, %v903_v15 }
  0x8a   :  { %986 = vmatmul.mubr.msk.bf16.vlgmr.msra.gmra.mrb[0].mxu0 %vm103_vm4, %v72_v17 }
  0x8b   :  { %989 = vmatprep.mubr.msk.bf16.mxu0 %vm1182_vm0, %v1181_v3 }
  0xde   :  { %v239_v18 = vpop.f32.mrb[0].mxu1 }
  0xdf   :  { %v1003_v19 = vpop.f32.mrb[1].mxu1 }
  0xe0   :  { %v242_v20 = vpop.f32.mrb[2].mxu1 }
  0xe1   :  { %v1004_v21 = vpop.f32.mrb[3].mxu1 }
 0x15d   :  { %v151_v22 = vpop.f32.mrb[0].mxu0 }
 0x15e   :  { %v245_v23 = vadd.f32 %v239_v18, %v151_v22  ;;  %v987_v24 = vpop.f32.mrb[1].mxu0 }
 0x15f   :  { %v154_v25 = vpop.f32.mrb[2].mxu0 }
 0x160   :  { %1100 = vtanh.f32 %v245_v23  ;;  %v988_v26 = vpop.f32.mrb[3].mxu0  ;;  %v918_v28 = vmul.f32 -1.442695, %v245_v23 }
 0x162   :  { %1102 = vpow2.f32 %v918_v28  ;;  %v1323_v28 = vld [vmem:[%s1466_s3] sm:$0xff]  }
 0x16a   :  { %v1101_v27 = vpop.eup %1100 }
 0x16b   :  { %255 = vrot.lane.b32.xlu1 %v1101_v27, %s1183_s1 }
 0x16c   :  { %v1103_v29 = vpop.eup %1102 }
 0x16d   :  { %v249_v30 = vadd.f32 1.0, %v1103_v29  ;;  %v1329_v29 = vld [vmem:[%s1466_s3 + $0x8] sm:$0xff]  }
 0x16f   :  { %1104 = vrcp.f32 %v249_v30 }
 0x179   :  { %v1105_v31 = vpop.eup %1104 }
 0x17a   :  { %v253_v34 = vmul.f32 0.0, %v1105_v31 }
 0x1dd   :  { %v256_v32 = vpop.permute.xlu1 %255 }
 0x1de   :  { %v258_v33 = vmul.f32 %v1105_v31, %v256_v32 }
 0x1e0   :  { %260 = vrot.lane.b32.xlu1 %v258_v33, %s1184_s2 }
 0x252   :  { %v261_v35 = vpop.permute.xlu1 %260 }
 0x253   :  { %v263_v36 = vadd.f32 %v261_v35, %v253_v34 }
 0x255   :  { %1106 = vtanh.f32 %v263_v36 }
 0x25f   :  { %v1107_v37 = vpop.eup %1106 }
 0x260   :  { %266 = vrot.lane.b32.xlu0 %v1107_v37, %s1183_s1 }
 0x2d2   :  { %v267_v38 = vpop.permute.xlu0 %266 }
 0x2d3   :  { %v1286_v39 = vmul.f32 %v1105_v31, %v267_v38 }
 0x2d5   :  { %v270_v40 = vpack.c.bf16 %v1286_v39, %v1286_v39 }
 0x2d7   :  { %272 = vrot.lane.b32.xlu1 %v270_v40, %s1184_s2 }
 0x349   :  { %v273_v41 = vpop.permute.xlu1 %272 }
 0x34a   :  { %1010 = vmatmul.mubr.msk.bf16.vlgmr.msra.gmra.mrb[4].mxu1 %vm201_vm5, %v273_v41 }
 0x34b   :  { %1014 = vmatpush3.bf16.msra.mxu1 %v1243_v6  ;;  %1017 = vmatprep.mubr.msk.bf16.mxu1 %vm1182_vm0, %v1181_v3 }
 0x34c   :  { %1015 = vmatprep.subr.bf16.mxu1 %v1181_v3 }
 0x34f   :  { %1016 = vmatpush3.bf16.msra.mxu1 %v1250_v7 }
 0x350   :  { %1021 = vmatprep.subr.bf16.mxu1 %v1181_v3 }
 0x41d   :  { %v311_v42 = vpop.f32.mrb[4].mxu1 }
 0x41e   :  { %v317_v43 = vadd.f32 %v311_v42, %v154_v25  ;;  %v1011_v44 = vpop.f32.mrb[5].mxu1 }
 0x41f   :  { %v314_v45 = vpop.f32.mrb[6].mxu1 }
 0x420   :  { %1108 = vtanh.f32 %v317_v43  ;;  %v1012_v46 = vpop.f32.mrb[7].mxu1  ;;  %v920_v48 = vmul.f32 -1.442695, %v317_v43 }
 0x422   :  { %1110 = vpow2.f32 %v920_v48 }
 0x42a   :  { %v1109_v47 = vpop.eup %1108 }
 0x42b   :  { %327 = vrot.lane.b32.xlu0 %v1109_v47, %s1183_s1 }
 0x42c   :  { %v1111_v49 = vpop.eup %1110 }
 0x42d   :  { %v321_v50 = vadd.f32 1.0, %v1111_v49 }
 0x42f   :  { %1112 = vrcp.f32 %v321_v50 }
 0x439   :  { %v1113_v51 = vpop.eup %1112 }
 0x43a   :  { %v325_v55 = vmul.f32 %v1113_v51, %v263_v36 }
 0x49d   :  { %v328_v52 = vpop.permute.xlu0 %327 }
 0x49e   :  { %v330_v53 = vmul.f32 %v1113_v51, %v328_v52 }
 0x4a0   :  { %332 = vrot.lane.b32.xlu1 %v330_v53, %s1184_s2 }
 0x4a4   :  { %43 = vperm.xlu1 %1088, %v30_v54  }
 0x512   :  { %v333_v56 = vpop.permute.xlu1 %332 }
 0x513   :  { %v335_v57 = vadd.f32 %v333_v56, %v325_v55  ;;  %v32_v55 = vld [vmem:[%s1463_s0 + $0x20] sm:$0xff] }
 0x515   :  { %1114 = vtanh.f32 %v335_v57 }
 0x51f   :  { %v1115_v58 = vpop.eup %1114 }
 0x520   :  { %338 = vrot.lane.b32.xlu0 %v1115_v58, %s1183_s1 }
 0x523   :  { %v44_v63 = vpop.permute.xlu1 %43 }
 0x524   :  { %46 = vperm.xlu0 %1087, %v31_v59   ;;  %vm56_vm6 = vcmp.eq.s32.totalorder %v44_v63, %v1274_v12  ;;  %v1099_v63 = vld [vmem:[%s1468_s5 + $0x10] ss:$0 sps:$4 sm:$0xff]  }
 0x525   :  { %v905_v0 = vsel %vm56_vm6, 1.0, %v1181_v3 }
 0x592   :  { %v339_v60 = vpop.permute.xlu0 %338 }
 0x593   :  { %v341_v61 = vmul.f32 %v1113_v51, %v339_v60  ;;  %v33_v60 = vld [vmem:[%s1463_s0 + $0x28] sm:$0xff] }
 0x595   :  { %v343_v62 = vpack.c.bf16 %v341_v61, %v341_v61  ;;  %v342_v32 = vmax.f32 %v1286_v39, %v341_v61  ;;  %v1367_v61 = vld [vmem:[%s1468_s5] sm:$0xff]  }
 0x596   :  { %1030 = vmatpush3.bf16.msra.mxu0 %v1367_v61 }
 0x597   :  { %345 = vrot.lane.b32.xlu1 %v343_v62, %s1184_s2  ;;  %1031 = vmatprep.subr.bf16.mxu0 %v1181_v3  ;;  %v1374_v62 = vld [vmem:[%s1468_s5 + $0x8] sm:$0xff]  }
 0x59a   :  { %1032 = vmatpush3.bf16.msra.mxu0 %v1374_v62 }
 0x59b   :  { %1033 = vmatprep.subr.bf16.mxu0 %v1181_v3 }
 0x5a3   :  { %v47_v1 = vpop.permute.xlu0 %46 }
 0x5a4   :  { %vm57_vm7 = vcmp.eq.s32.totalorder %v47_v1, %v1274_v12  ;;  %v1388_v1 = vld [vmem:[%s1467_s4] sm:$0xff] }
 0x5a5   :  { %v906_v2 = vsel %vm57_vm7, 1.0, %v1181_v3 }
 0x5a6   :  { %v73_v4 = vpack.c.bf16 %v906_v2, %v905_v0  ;;  %v1381_v0 = vsel %vm503_vm8, %v1099_v63, 0 }
 0x5a7   :  { %1034 = vmatpush3.bf16.msra.mxu0 %v1381_v0 }
 0x5a8   :  { %990 = vmatmul.mubr.msk.bf16.gmra.mrb[4].mxu0 %vm103_vm4, %v73_v4  ;;  %1047 = vmatprep.subr.bf16.mxu0 %v1181_v3 }
 0x5a9   :  { %993 = vmatprep.mubr.msk.bf16.mxu0 %vm1182_vm0, %v1181_v3 }
 0x609   :  { %v346_v5 = vpop.permute.xlu1 %345 }
 0x60a   :  { %1018 = vmatmul.mubr.msk.bf16.vlgmr.msra.gmra.mrb[8].mxu1 %vm201_vm5, %v346_v5 }
 0x60b   :  { %1025 = vmatprep.mubr.msk.bf16.mxu1 %vm1182_vm0, %v1181_v3  ;;  %1022 = vmatpush3.bf16.msra.mxu1 %v1323_v28 }
 0x60c   :  { %1023 = vmatprep.subr.bf16.mxu1 %v1181_v3 }
 0x60f   :  { %1024 = vmatpush3.bf16.msra.mxu1 %v1329_v29 }
 0x610   :  { %1039 = vmatprep.subr.bf16.mxu1 %v1181_v3 }
 0x67b   :  { %v159_v8 = vpop.f32.mrb[4].mxu0 }
 0x67c   :  { %v991_v9 = vpop.f32.mrb[5].mxu0 }
 0x67d   :  { %v162_v10 = vpop.f32.mrb[6].mxu0 }
 0x67e   :  { %v992_v11 = vpop.f32.mrb[7].mxu0 }
 0x6dd   :  { %v384_v13 = vpop.f32.mrb[8].mxu1 }
 0x6de   :  { %v390_v14 = vadd.f32 %v384_v13, %v159_v8  ;;  %v1019_v15 = vpop.f32.mrb[9].mxu1 }
 0x6df   :  { %v387_v16 = vpop.f32.mrb[10].mxu1 }
 0x6e0   :  { %1116 = vtanh.f32 %v390_v14  ;;  %v1020_v17 = vpop.f32.mrb[11].mxu1  ;;  %v922_v19 = vmul.f32 -1.442695, %v390_v14 }
 0x6e2   :  { %1118 = vpow2.f32 %v922_v19 }
 0x6ea   :  { %v1117_v18 = vpop.eup %1116 }
 0x6eb   :  { %400 = vrot.lane.b32.xlu0 %v1117_v18, %s1183_s1 }
 0x6ec   :  { %v1119_v20 = vpop.eup %1118 }
 0x6ed   :  { %v394_v21 = vadd.f32 1.0, %v1119_v20 }
 0x6ef   :  { %1120 = vrcp.f32 %v394_v21 }
 0x6f9   :  { %v1121_v22 = vpop.eup %1120 }
 0x6fa   :  { %v398_v25 = vmul.f32 %v1121_v22, %v335_v57 }
 0x75d   :  { %v401_v23 = vpop.permute.xlu0 %400 }
 0x75e   :  { %v403_v24 = vmul.f32 %v1121_v22, %v401_v23 }
 0x760   :  { %405 = vrot.lane.b32.xlu1 %v403_v24, %s1184_s2 }
 0x7d2   :  { %v406_v26 = vpop.permute.xlu1 %405 }
 0x7d3   :  { %v408_v27 = vadd.f32 %v406_v26, %v398_v25 }
 0x7d5   :  { %1122 = vtanh.f32 %v408_v27 }
 0x7df   :  { %v1123_v30 = vpop.eup %1122 }
 0x7e0   :  { %411 = vrot.lane.b32.xlu0 %v1123_v30, %s1183_s1 }
 0x852   :  { %v412_v31 = vpop.permute.xlu0 %411 }
 0x853   :  { %v414_v33 = vmul.f32 %v1121_v22, %v412_v31 }
 0x855   :  { %v415_v34 = vmax.f32 %v342_v32, %v414_v33  ;;  %v560_v35 = vpack.c.bf16 %v414_v33, %v414_v33 }
 0x857   :  { %v416_v36 = vpack.c.bf16 %v415_v34, %v415_v34  ;;  %562 = vrot.lane.b32.xlu0 %v560_v35, %s1184_s2 }
 0x859   :  { %418 = vrot.lane.b32.xlu1 %v416_v36, %s1184_s2 }
 0x8c9   :  { %v563_v38 = vpop.permute.xlu0 %562 }
 0x8cb   :  { %v419_v37 = vpop.permute.xlu1 %418 }
 0x8cc   :  { %1026 = vmatmul.mubr.msk.bf16.vlgmr.msra.gmra.mrb[12].mxu1 %vm201_vm5, %v419_v37 }
 0x8cd   :  { %1040 = vmatpush3.bf16.msra.mxu1 %v1243_v6  ;;  %1043 = vmatprep.mubr.msk.bf16.mxu1 %vm1182_vm0, %v1181_v3 }
 0x8ce   :  { %1041 = vmatprep.subr.bf16.mxu1 %v1181_v3 }
 0x8d1   :  { %1042 = vmatpush3.bf16.msra.mxu1 %v1250_v7 }
 0x8d2   :  { %1055 = vmatprep.subr.bf16.mxu1 %v1181_v3 }
 0x8d4   :  { %1044 = vmatmul.mubr.msk.bf16.vlgmr.msra.gmra.mrb[16].mxu1 %vm201_vm5, %v563_v38 }
 0x8d5   :  { %1056 = vmatpush3.bf16.msra.mxu1 %v1243_v6  ;;  %1059 = vmatprep.mubr.msk.bf16.mxu1 %vm1182_vm0, %v1181_v3 }
 0x8d6   :  { %1057 = vmatprep.subr.bf16.mxu1 %v1181_v3 }
 0x8d9   :  { %1058 = vmatpush3.bf16.msra.mxu1 %v1250_v7 }
 0x8da   :  { %1071 = vmatprep.subr.bf16.mxu1 %v1181_v3 }
 0x99f   :  { %v469_v39 = vpop.f32.mrb[12].mxu1 }
 0x9a0   :  { %v1027_v40 = vpop.f32.mrb[13].mxu1  ;;  %v475_v2 = vmul.f32 %v469_v39, %v1388_v1 }
 0x9a1   :  { %v472_v41 = vpop.f32.mrb[14].mxu1 }
 0x9a2   :  { %v1028_v42 = vpop.f32.mrb[15].mxu1  ;;  %v477_v5 = vsel %vm476_vm9, %v475_v2, 0.0 }
 0x9a7   :  { %v601_v43 = vpop.f32.mrb[16].mxu1 }
 0x9a8   :  { %v607_v44 = vadd.f32 %v601_v43, %v162_v10  ;;  %v1045_v45 = vpop.f32.mrb[17].mxu1  ;;  %v478_v10 = vrot.slane %v477_v5, 4 }
 0x9a9   :  { %v604_v46 = vpop.f32.mrb[18].mxu1 }
 0x9aa   :  { %1124 = vtanh.f32 %v607_v44  ;;  %v1046_v47 = vpop.f32.mrb[19].mxu1  ;;  %v931_v49 = vmul.f32 -1.442695, %v607_v44  ;;  %v479_v11 = vadd.f32 %v478_v10, %v477_v5 }
 0x9ac   :  { %1126 = vpow2.f32 %v931_v49  ;;  %v480_v13 = vrot.slane %v479_v11, 2 }
 0x9ae   :  { %v481_v15 = vadd.f32 %v480_v13, %v479_v11 }
 0x9b0   :  { %v482_v19 = vrot.slane %v481_v15, 1 }
 0x9b2   :  { %v483_v21 = vadd.f32 %v482_v19, %v481_v15 }
 0x9b4   :  { %v1125_v48 = vpop.eup %1124  ;;  %v484_v22 = vpack.c.bf16 %v483_v21, %v483_v21 }
 0x9b5   :  { %617 = vrot.lane.b32.xlu1 %v1125_v48, %s1183_s1 }
 0x9b6   :  { %v1127_v50 = vpop.eup %1126 }
 0x9b7   :  { %v611_v51 = vadd.f32 1.0, %v1127_v50 }
 0x9b9   :  { %1128 = vrcp.f32 %v611_v51 }
 0x9c3   :  { %v1129_v52 = vpop.eup %1128 }
 0x9c4   :  { %v615_v56 = vmul.f32 %v1129_v52, %v408_v27 }
 0xa27   :  { %v618_v53 = vpop.permute.xlu1 %617 }
 0xa28   :  { %v620_v54 = vmul.f32 %v1129_v52, %v618_v53 }
 0xa2a   :  { %622 = vrot.lane.b32.xlu0 %v620_v54, %s1184_s2 }
 0xa2e   :  { %49 = vperm.xlu0 %1087, %v32_v55  }
 0xa9c   :  { %v623_v57 = vpop.permute.xlu0 %622 }
 0xa9d   :  { %v1357_v58 = vadd.f32 %v623_v57, %v615_v56 }
 0xa9f   :  { %1130 = vtanh.f32 %v1357_v58 }
 0xaa9   :  { %v1131_v59 = vpop.eup %1130 }
 0xaaa   :  { %628 = vrot.lane.b32.xlu1 %v1131_v59, %s1183_s1 }
 0xaad   :  { %v50_v14 = vpop.permute.xlu0 %49 }
 0xaae   :  { %52 = vperm.xlu1 %1088, %v33_v60   ;;  %vm58_vm10 = vcmp.eq.s32.totalorder %v50_v14, %v1274_v12 }
 0xaaf   :  { %v907_v17 = vsel %vm58_vm10, 1.0, %v1181_v3 }
 0xb1c   :  { %v629_v4 = vpop.permute.xlu1 %628 }
 0xb1d   :  { %v1392_v8 = vmul.f32 %v1129_v52, %v629_v4 }
 0xb1f   :  { %v632_v9 = vpack.c.bf16 %v1392_v8, %v1392_v8 }
 0xb21   :  { %634 = vrot.lane.b32.xlu0 %v632_v9, %s1184_s2 }
 0xb2d   :  { %v53_v16 = vpop.permute.xlu1 %52 }
 0xb2e   :  { %vm59_vm11 = vcmp.eq.s32.totalorder %v53_v16, %v1274_v12 }
 0xb2f   :  { %v908_v18 = vsel %vm59_vm11, 1.0, %v1181_v3 }
 0xb30   :  { %v74_v20 = vpack.c.bf16 %v908_v18, %v907_v17 }
 0xb32   :  { %994 = vmatmul.mubr.msk.bf16.gmra.mrb[8].mxu0 %vm103_vm4, %v74_v20 }
 0xb33   :  { %1035 = vmatprep.mubr.msk.bf16.mxu0 %vm1182_vm0, %v1181_v3 }
 0xb3a   :  { %1036 = vmatmul.mubr.msk.bf16.vlgmr.msra.gmra.mrb[12].mxu0 %vm476_vm9, %v484_v22 }
 0xb3b   :  { %1048 = vmatpush3.bf16.msra.mxu0 %v1243_v6  ;;  %1051 = vmatprep.mubr.msk.bf16.mxu0 %vm1182_vm0, %v1181_v3 }
 0xb3c   :  { %1049 = vmatprep.subr.bf16.mxu0 %v1181_v3 }
 0xb3f   :  { %1050 = vmatpush3.bf16.msra.mxu0 %v1250_v7 }
 0xb40   :  { %1063 = vmatprep.subr.bf16.mxu0 %v1181_v3 }
 0xb93   :  { %v635_v12 = vpop.permute.xlu0 %634 }
 0xb94   :  { %1052 = vmatmul.mubr.msk.bf16.vlgmr.msra.gmra.mrb[16].mxu0 %vm201_vm5, %v635_v12 }
 0xb95   :  { %1064 = vmatpush3.bf16.msra.mxu0 %v1323_v28  ;;  %1067 = vmatprep.mubr.msk.bf16.mxu0 %vm1182_vm0, %v1181_v3 }
 0xb96   :  { %1065 = vmatprep.subr.bf16.mxu0 %v1181_v3 }
 0xb99   :  { %1066 = vmatpush3.bf16.msra.mxu0 %v1329_v29 }
 0xc05   :  { %v167_v6 = vpop.f32.mrb[8].mxu0 }
 0xc06   :  { %v995_v23 = vpop.f32.mrb[9].mxu0 }
 0xc07   :  { %v170_v24 = vpop.f32.mrb[10].mxu0 }
 0xc08   :  { %v996_v25 = vpop.f32.mrb[11].mxu0 }
 0xc0d   :  { %v1417_v26 = vpop.f32.mrb[12].mxu0 }
 0xc0e   :  { %v1037_v7 = vpop.f32.mrb[13].mxu0 }
 0xc0f   :  { %v544_v27 = vpop.f32.mrb[14].mxu0 }
 0xc10   :  { %v1038_v30 = vpop.f32.mrb[15].mxu0 }
 0xc67   :  { %v673_v31 = vpop.f32.mrb[16].mxu0 }
 0xc68   :  { %v679_v32 = vadd.f32 %v673_v31, %v167_v6  ;;  %v1053_v33 = vpop.f32.mrb[17].mxu0 }
 0xc69   :  { %v676_v28 = vpop.f32.mrb[18].mxu0 }
 0xc6a   :  { %1132 = vtanh.f32 %v679_v32  ;;  %v1054_v34 = vpop.f32.mrb[19].mxu0  ;;  %v933_v36 = vmul.f32 -1.442695, %v679_v32 }
 0xc6c   :  { %1134 = vpow2.f32 %v933_v36 }
 0xc74   :  { %v1133_v35 = vpop.eup %1132 }
 0xc75   :  { %689 = vrot.lane.b32.xlu1 %v1133_v35, %s1183_s1 }
 0xc76   :  { %v1135_v29 = vpop.eup %1134 }
 0xc77   :  { %v683_v37 = vadd.f32 1.0, %v1135_v29 }
 0xc79   :  { %1136 = vrcp.f32 %v683_v37 }
 0xc83   :  { %v1137_v38 = vpop.eup %1136 }
 0xc84   :  { %v687_v41 = vmul.f32 %v1137_v38, %v1357_v58 }
 0xce7   :  { %v690_v39 = vpop.permute.xlu1 %689 }
 0xce8   :  { %v692_v40 = vmul.f32 %v1137_v38, %v690_v39 }
 0xcea   :  { %694 = vrot.lane.b32.xlu0 %v692_v40, %s1184_s2 }
 0xd5c   :  { %v695_v42 = vpop.permute.xlu0 %694 }
 0xd5d   :  { %v697_v43 = vadd.f32 %v695_v42, %v687_v41 }
 0xd5f   :  { %1138 = vtanh.f32 %v697_v43 }
 0xd69   :  { %v1139_v44 = vpop.eup %1138 }
 0xd6a   :  { %700 = vrot.lane.b32.xlu1 %v1139_v44, %s1183_s1 }
 0xddc   :  { %v701_v45 = vpop.permute.xlu1 %700 }
 0xddd   :  { %v703_v46 = vmul.f32 %v1137_v38, %v701_v45 }
 0xddf   :  { %v705_v47 = vpack.c.bf16 %v703_v46, %v703_v46  ;;  %v704_v9 = vmax.f32 %v1392_v8, %v703_v46 }
 0xde1   :  { %707 = vrot.lane.b32.xlu0 %v705_v47, %s1184_s2 }
 0xe53   :  { %v708_v48 = vpop.permute.xlu0 %707 }
 0xe54   :  { %1060 = vmatmul.mubr.msk.bf16.vlgmr.msra.gmra.mrb[20].mxu1 %vm201_vm5, %v708_v48 }
 0xe55   :  { %1072 = vmatpush3.bf16.msra.mxu1 %v1367_v61  ;;  %1077 = vmatprep.mubr.msk.bf16.mxu1 %vm1182_vm0, %v1181_v3 }
 0xe56   :  { %1073 = vmatprep.subr.bf16.mxu1 %v1181_v3 }
 0xe59   :  { %1074 = vmatpush3.bf16.msra.mxu1 %v1374_v62 }
 0xe5a   :  { %1075 = vmatprep.subr.bf16.mxu1 %v1181_v3 }
 0xe5d   :  { %1076 = vmatpush3.bf16.msra.mxu1 %v1381_v0  ;;  %v188_v0 = vld [vmem:[%s1469_s6] sm:$0x1]  ;;  %s1185_s6 = smov [#allocation2]  }
 0xe5e   :  { %v542_v2 = vadd.f32 %v1417_v26, %v188_v0  ;;  %s895_s12 = sshll.u32 %s1185_s6, 4  ;;  %s896_s12 = int_to_ptr.vmem [resolvable:$true] %s895_s12 }
 0xe5f   :  { %s1156_s13 = scalar_lea.vmem %s896_s12, 32  ;;  %p1161_p1 = scmp.lt.s32.totalorder %s896_s12, %s896_s12 }
 0xe60   :  { %v548_v4 = vsel %vm547_vm12, %v542_v2, -inf  ;;  %p1157_p0 = scmp.ne.s32.totalorder %s896_s12, %s1156_s13  ;;  %p1162_p2 = scmp.lt.s32.totalorder %s1156_s13, %s1156_s13 }
 0xe62   :  { %p1163_p3 = por %p1162_p2, %p1161_p1 }
 0xe64   :  { %p1164_p4 = pnand %p1163_p3, %p1157_p0 }
 0xf27   :  { %v746_v49 = vpop.f32.mrb[20].mxu1 }
 0xf28   :  { %v752_v50 = vadd.f32 %v746_v49, %v170_v24  ;;  %v1061_v51 = vpop.f32.mrb[21].mxu1 }
 0xf29   :  { %v749_v52 = vpop.f32.mrb[22].mxu1 }
 0xf2a   :  { %1140 = vtanh.f32 %v752_v50  ;;  %v1062_v53 = vpop.f32.mrb[23].mxu1  ;;  %v935_v55 = vmul.f32 -1.442695, %v752_v50 }
 0xf2c   :  { %1142 = vpow2.f32 %v935_v55 }
 0xf34   :  { %v1141_v54 = vpop.eup %1140 }
 0xf35   :  { %762 = vrot.lane.b32.xlu1 %v1141_v54, %s1183_s1 }
 0xf36   :  { %v1143_v56 = vpop.eup %1142 }
 0xf37   :  { %v756_v57 = vadd.f32 1.0, %v1143_v56 }
 0xf39   :  { %1144 = vrcp.f32 %v756_v57 }
 0xf43   :  { %v1145_v58 = vpop.eup %1144 }
 0xf44   :  { %v760_v3 = vmul.f32 %v1145_v58, %v697_v43 }
 0xfa7   :  { %v763_v59 = vpop.permute.xlu1 %762 }
 0xfa8   :  { %v765_v60 = vmul.f32 %v1145_v58, %v763_v59 }
 0xfaa   :  { %767 = vrot.lane.b32.xlu0 %v765_v60, %s1184_s2 }
0x101c   :  { %v768_v61 = vpop.permute.xlu0 %767 }
0x101d   :  { %v770_v62 = vadd.f32 %v768_v61, %v760_v3 }
0x101f   :  { %1146 = vtanh.f32 %v770_v62 }
0x1029   :  { %v1147_v63 = vpop.eup %1146 }
0x102a   :  { %773 = vrot.lane.b32.xlu1 %v1147_v63, %s1183_s1 }
0x104e   :  { %549 = vmax.xlane.f32.xlu1 %v548_v4 }
0x109c   :  { %v774_v5 = vpop.permute.xlu1 %773 }
0x109d   :  { %v776_v10 = vmul.f32 %v1145_v58, %v774_v5 }
0x109f   :  { %v777_v11 = vmax.f32 %v704_v9, %v776_v10 }
0x10a1   :  { %v778_v13 = vpack.c.bf16 %v777_v11, %v777_v11 }
0x10a3   :  { %780 = vrot.lane.b32.xlu0 %v778_v13, %s1184_s2 }
0x10db   :  { %v550_v25 = vpop.xlane.xlu1 %549 }
0x10dc   :  { %v551_v26 = vsub.f32 %v542_v2, %v550_v25 }
0x10de   :  { %v552_v7 = vmul.f32 1.442695, %v551_v26 }
0x10e0   :  { %1148 = vpow2.f32 %v552_v7 }
0x10ea   :  { %v1149_v28 = vpop.eup %1148 }
0x10eb   :  { %v554_v34 = vsel %vm547_vm12, %v1149_v28, 0.0 }
0x1115   :  { %v781_v14 = vpop.permute.xlu0 %780 }
0x1116   :  { %1068 = vmatmul.mubr.msk.bf16.vlgmr.msra.gmra.mrb[20].mxu0 %vm201_vm5, %v781_v14 }
0x11e9   :  { %v819_v15 = vpop.f32.mrb[20].mxu0 }
0x11ea   :  { %v825_v16 = vmul.f32 %v819_v15, %v1388_v1  ;;  %v1069_v17 = vpop.f32.mrb[21].mxu0 }
0x11eb   :  { %v822_v18 = vpop.f32.mrb[22].mxu0 }
0x11ec   :  { %v826_v19 = vsel %vm476_vm9, %v825_v16, 0.0  ;;  %v1070_v20 = vpop.f32.mrb[23].mxu0 }
0x11ed   :  { %v827_v21 = vrot.slane %v826_v19, 4 }
0x11ef   :  { %v828_v22 = vadd.f32 %v827_v21, %v826_v19 }
0x11f1   :  { %v829_v12 = vrot.slane %v828_v22, 2 }
0x11f3   :  { %v830_v8 = vadd.f32 %v829_v12, %v828_v22 }
0x11f5   :  { %v831_v6 = vrot.slane %v830_v8, 1 }
0x11f7   :  { %v832_v23 = vadd.f32 %v831_v6, %v830_v8 }
0x11f9   :  { %v833_v24 = vpack.c.bf16 %v832_v23, %v832_v23 }
0x11fb   :  { %1078 = vmatmul.mubr.msk.bf16.vlgmr.msra.gmra.mrb[24].mxu1 %vm476_vm9, %v833_v24 }
0x12ce   :  { %v871_v27 = vpop.f32.mrb[24].mxu1 }
0x12cf   :  { %v872_v1 = vadd.f32 %v871_v27, %v188_v0  ;;  %v1079_v30 = vpop.f32.mrb[25].mxu1 }
0x12d0   :  { %v874_v31 = vpop.f32.mrb[26].mxu1 }
0x12d1   :  { %v1080_v32 = vpop.f32.mrb[27].mxu1  ;;  %v877_v33 = vsel %vm547_vm12, %v872_v1, -inf }
0x12d2   :  { %878 = vmax.xlane.f32.xlu0 %v877_v33 }
0x12d6   :  { %555 = vadd.xlane.f32.xlu0 %v554_v34 }
0x135f   :  { %v879_v35 = vpop.xlane.xlu0 %878 }
0x1360   :  { %v880_v36 = vsub.f32 %v872_v1, %v879_v35 }
0x1362   :  { %v881_v29 = vmul.f32 1.442695, %v880_v36 }
0x1363   :  { %v556_v37 = vpop.xlane.xlu0 %555 }
0x1364   :  { %1150 = vpow2.f32 %v881_v29 }
0x1365   :  { %1152 = vrcp.f32 %v556_v37 }
0x136e   :  { %v1151_v38 = vpop.eup %1150 }
0x136f   :  { %v1153_v39 = vpop.eup %1152  ;;  %v883_v40 = vsel %vm547_vm12, %v1151_v38, 0.0 }
0x1370   :  { %884 = vadd.xlane.f32.xlu1 %v883_v40  ;;  %v558_v41 = vmul.f32 %v1153_v39, %v1149_v28 }
0x1372   :  { %559 = vst.msk [vmem:[#allocation2] sm:$0x1] %vm547_vm12, %v558_v41 }
0x13fd   :  { %v885_v42 = vpop.xlane.xlu1 %884 }
0x13fe   :  { %1154 = vrcp.f32 %v885_v42 }
0x1408   :  { %v1155_v43 = vpop.eup %1154 }
0x1409   :  { %v887_v44 = vmul.f32 %v1155_v43, %v1151_v38 }
0x140b   :  { %888 = vst.msk [vmem:[#allocation2 + $0x1] sm:$0x1] %vm547_vm12, %v887_v44 }
0x140c   :  { %1167 = shalt.err (!%p1164_p4)
}
0x140d   :  { %s1168_s16 = scalar_lea.hbm %s1470_s7, 32 }
0x140e   :  { %p1169_p5 = scmp.ne.s32.totalorder %s1470_s7, %s1168_s16  ;;  %p1172_p6 = scmp.lt.u32.totalorder %s1168_s16, %s1470_s7 }
0x1410   :  { %p1174_p7 = pnand %p1172_p6, %p1169_p5 }
0x1412   :  { %1177 = shalt.err (!%p1174_p7)
}
0x1413   :  { %898 = dma.vmem_to_hbm [thread:$0]  %s896_s12, 32, %s1470_s7, [#allocation3]  }
0x1414   :  { %1178 = dma.done.wait [#allocation3], 32  }
0x1415   :  { %1179 = vsyncadd [#allocation3], 4294967264 }
0x1416   :  { %902 = vsyncpa [#allocation3], 1 }

</bundles_post_ra>
